<compile_context>
chip_gen: v5e
topology: v5e:2x2
jax: 0.10.0
libtpu: 0.0.40
codegen_flags: <defaults>
</compile_context>

<pallas_src>
import math

import jax
import jax.numpy as jnp
from jax.experimental import pallas as pl
from jax.experimental.pallas import tpu as pltpu


def _round_up(n, m):
    return ((n + m - 1) // m) * m


def _vmem_budgets():
    """(tile budget, vmem_limit_bytes) chosen from the chip's VMEM capacity."""
    try:
        cap = int(pltpu.get_tpu_info().vmem_capacity_bytes)
    except Exception:
        cap = 128 * 1024 * 1024
    if cap <= 64 * 1024 * 1024:
        # v7x-class: 64 MiB VMEM per TensorCore.
        return 24 * 1024 * 1024, 48 * 1024 * 1024
    # v5e / v6e: 128 MiB physical VMEM (v5e default scoped limit is only
    # 16 MiB, hence the explicit vmem_limit_bytes below).
    return 64 * 1024 * 1024, 100 * 1024 * 1024


def _pick_tiles(nb_experts, B, D, in_itemsize, out_itemsize, vmem_budget_bytes):
    """Lane-dense (bt, dt) whose double-buffered footprint fits the budget.

    Footprint = 2 * (E * in_itemsize + out_itemsize) * bt * dt.
    Tiles do NOT have to divide B/D — edge blocks are masked by Pallas.
    """
    per_elem = 2 * (nb_experts * in_itemsize + out_itemsize)
    dt_cap = 4096 if nb_experts <= 4 else 2048
    dt = min(_round_up(D, 128), dt_cap)
    # Shrink dt if even an 8-row tile would blow the budget (huge E).
    if 8 * dt * per_elem > vmem_budget_bytes:
        dt = max(128, (vmem_budget_bytes // (8 * per_elem)) // 128 * 128)
    # Grow bt to fill the budget.
    bt_budget = max(8, (vmem_budget_bytes // (dt * per_elem)) // 8 * 8)
    bt = min(_round_up(B, 8), 1024, bt_budget)
    # Full-extent (possibly unaligned) blocks are always legal; prefer them
    # over a block larger than the array.
    if dt >= D:
        dt = D
    if bt >= B:
        bt = B
    return bt, dt


def _make_gate_combine_kernel(nb_experts):
    """probs_ref: SMEM (E,) f32 (scalar prefetch); h_refs[e]/o_ref: VMEM (bt, dt)."""

    def kernel(probs_ref, *refs):
        h_refs = refs[:nb_experts]
        o_ref = refs[nb_experts]
        # Unrolled VPU multiply-accumulate over the (small) expert axis with
        # scalar weights from SMEM.  Multiplying the (possibly bf16) tile by
        # the f32 scalar directly fuses the upcast into the mul (no separate
        # astype pass); single full-tile store per grid step.
        # TODO(synk): on v6e/v7x a pure-bf16 accumulate would halve VALU work at
        # large E; kept f32 accumulation for accuracy and v5e (no bf16 VALU).
        acc = h_refs[0][...] * probs_ref[0]
        for e in range(1, nb_experts):
            acc = acc + h_refs[e][...] * probs_ref[e]
        o_ref[...] = acc.astype(o_ref.dtype)

    return kernel


def topk_softmax_gate_combine(probs, h_list, *, min_pallas_bytes=1 << 20):
    """probs: (E,) f32 gate probabilities; h_list: E arrays of shape [B, D].

    Returns sum_e probs[e] * h_list[e], shape [B, D], dtype of h_list[0].
    """
    nb_experts = len(h_list)
    B, D = h_list[0].shape
    dtype = h_list[0].dtype
    assert probs.shape == (nb_experts,)
    assert all(a.shape == (B, D) and a.dtype == dtype for a in h_list)

    in_item = jnp.dtype(dtype).itemsize
    out_item = jnp.dtype(dtype).itemsize
    probs = jnp.asarray(probs, jnp.float32)

    total_bytes = (nb_experts * in_item + out_item) * B * D
    if total_bytes < min_pallas_bytes:
        # Tiny shapes: fixed pallas_call / pipeline setup dominates — plain JAX.
        acc = h_list[0].astype(jnp.float32) * probs[0]
        for e in range(1, nb_experts):
            acc = acc + h_list[e].astype(jnp.float32) * probs[e]
        return acc.astype(dtype)

    vmem_budget, vmem_limit = _vmem_budgets()
    bt, dt = _pick_tiles(nb_experts, B, D, in_item, out_item, vmem_budget)

    nb_blocks = pl.cdiv(B, bt)
    nd_blocks = pl.cdiv(D, dt)
    # v7x megacore: a single-block grid would leave one TensorCore idle on this
    # bandwidth-bound op — split one axis when possible (harmless on v5e/v6e).
    if nb_blocks * nd_blocks == 1:
        if B > 8:
            bt = _round_up(-(-B // 2), 8)
            nb_blocks = pl.cdiv(B, bt)
        elif D > 128:
            dt = _round_up(-(-D // 2), 128)
            nd_blocks = pl.cdiv(D, dt)

    # Put the axis with more blocks first so the leading parallel axis keeps
    # both v7x TensorCores busy.
    if nb_blocks >= nd_blocks:
        grid = (nb_blocks, nd_blocks)
        index_map = lambda i, j, probs_ref: (i, j)
    else:
        grid = (nd_blocks, nb_blocks)
        index_map = lambda j, i, probs_ref: (i, j)

    in_specs = [pl.BlockSpec((bt, dt), index_map) for _ in range(nb_experts)]
    out_spec = pl.BlockSpec((bt, dt), index_map)

    cost = pl.CostEstimate(
        flops=2 * nb_experts * B * D,
        transcendentals=0,
        bytes_accessed=total_bytes,
    )

    return pl.pallas_call(
        _make_gate_combine_kernel(nb_experts),
        out_shape=jax.ShapeDtypeStruct((B, D), dtype),
        grid_spec=pltpu.PrefetchScalarGridSpec(
            num_scalar_prefetch=1,          # probs table lands in SMEM pre-grid
            grid=grid,
            in_specs=in_specs,
            out_specs=out_spec,
        ),
        compiler_params=pltpu.CompilerParams(
            dimension_semantics=("parallel", "parallel"),
            vmem_limit_bytes=vmem_limit,
        ),
        cost_estimate=cost,
    )(probs, *h_list)


class TopKSoftmaxGate:
    """JAX port of TopKSoftmaxGate_pytorch (deterministic synthetic init)."""

    def __init__(self, nb_experts, k=2, use_bias=True, temperature=1.0, seed=0):
        self.nb_experts = nb_experts
        self.k = k
        self.use_bias = use_bias
        self.temperature = temperature
        self.iterations = 0.0                      # non-trainable buffer, as in PyTorch
        # nn.init.xavier_uniform_ on (nb_experts, 1): bound = sqrt(6 / (fan_in + fan_out))
        bound = math.sqrt(6.0 / (nb_experts + 1))
        self.expert_weights = jax.random.uniform(
            jax.random.PRNGKey(seed), (nb_experts, 1),
            dtype=jnp.float32, minval=-bound, maxval=bound)
        self.bias = jnp.zeros((nb_experts,), jnp.float32) if use_bias else None
        self.last_k = None
        # TODO(synk): KLDivLoss / LogSoftmax members of the reference module are never
        # used in the (truncated) forward, so they are not ported.

    def __call__(self, h, x, permutation_weights):
        # --- exact semantics of the reference forward (as far as it goes) ---
        assert all(h[i].shape[1] == h[i + 1].shape[1] for i in range(len(h) - 1))
        # TODO(synk): the reference stacks h and then calls torch.concat on the already
        # stacked tensor (a no-op/bug in the original repo).  We deliberately do NOT
        # materialize a stacked [E, B, D] tensor: the kernel consumes the E per-expert
        # arrays directly, halving HBM traffic for this memory-bound op.
        if self.temperature != 0.0:
            p = self.expert_weights.shape[0]
            # TODO(synk): Python-state schedule; under jit the annealed k freezes at
            # trace time (same caveat as any host-side schedule).
            self.iterations += 1.0
            scheduler = 1.0 - math.exp(-self.iterations / self.temperature)
            k = int(p - math.floor(scheduler * p))
        else:
            k = self.k
        k = max(1, min(k, self.nb_experts))
        self.last_k = k

        # TODO(synk): reference forward is truncated after computing k; completion below
        # is the standard top-k softmax gating + weighted combine of expert outputs.
        # TODO(synk): `x` and `permutation_weights` are never used in the truncated forward.
        logits = self.expert_weights[:, 0]
        if self.use_bias:
            logits = logits + self.bias
        kth = jax.lax.top_k(logits, k)[0][-1]          # tiny (E,) op -> plain JAX glue
        # NOTE: `>=` keeps every expert tied at the k-th logit (can exceed k on exact
        # ties); mask value is f32 so exp underflows cleanly to 0.
        masked = jnp.where(logits >= kth, logits, jnp.float32(-1e30))
        probs = jax.nn.softmax(masked)                  # (E,) f32, computed off the hot path
        return topk_softmax_gate_combine(probs, list(h))


if __name__ == "__main__":
    nb_experts = 4

    def ref_combine(p, hs):
        return jnp.einsum("e,ebd->bd", p,
                          jnp.stack([a.astype(jnp.float32) for a in hs], axis=0))

    # --- (1) gate module at a tiny shape (goes through the plain-JAX fallback) ---
    B0, D0 = 8, 32
    key = jax.random.PRNGKey(0)
    keys = jax.random.split(key, nb_experts + 2)
    h0 = [jax.random.normal(keys[i], (B0, D0), dtype=jnp.float32)
          for i in range(nb_experts)]
    x0 = jax.random.normal(keys[-2], (B0, D0), dtype=jnp.float32)
    permutation_weights = jnp.eye(nb_experts, dtype=jnp.float32)

    gate = TopKSoftmaxGate(nb_experts, k=2, use_bias=True, temperature=1.0, seed=0)
    out0 = jax.block_until_ready(gate(h0, x0, permutation_weights))

    logits = gate.expert_weights[:, 0] + gate.bias
    kth = jnp.sort(logits)[-gate.last_k]
    probs = jax.nn.softmax(jnp.where(logits >= kth, logits, -1e30))
    assert out0.shape == (B0, D0) and out0.dtype == jnp.float32
    assert jnp.allclose(out0, ref_combine(probs, h0), atol=1e-5, rtol=1e-5)

    # --- (2) Pallas path: ragged B/D (masked edge blocks, no pad/slice copies) ---
    B1, D1 = 24, 160
    keys1 = jax.random.split(jax.random.PRNGKey(1), nb_experts)
    h1 = [jax.random.normal(keys1[i], (B1, D1), dtype=jnp.float32)
          for i in range(nb_experts)]
    out1 = jax.block_until_ready(
        topk_softmax_gate_combine(probs, h1, min_pallas_bytes=0))
    assert out1.shape == (B1, D1) and out1.dtype == jnp.float32
    assert jnp.allclose(out1, ref_combine(probs, h1), atol=1e-5, rtol=1e-5)

    # --- (3) Pallas path: aligned multi-block grid with bf16 expert outputs ---
    B2, D2 = 128, 512
    keys2 = jax.random.split(jax.random.PRNGKey(2), nb_experts)
    h2 = [jax.random.normal(keys2[i], (B2, D2), dtype=jnp.float32).astype(jnp.bfloat16)
          for i in range(nb_experts)]
    out2 = jax.block_until_ready(
        topk_softmax_gate_combine(probs, h2, min_pallas_bytes=0))
    assert out2.shape == (B2, D2) and out2.dtype == jnp.bfloat16
    assert jnp.allclose(out2.astype(jnp.float32), ref_combine(probs, h2),
                        atol=2e-2, rtol=2e-2)

    print("KERNEL_OK")
</pallas_src>

<mosaic_0001>
module attributes {stable_mosaic.version = 11 : i64} {
  func.func @kernel(%arg0: i32, %arg1: i32, %arg2: memref<4xf32, #tpu.memory_space<smem>>, %arg3: memref<16x160xf32, #tpu.memory_space<vmem>>, %arg4: memref<16x160xf32, #tpu.memory_space<vmem>>, %arg5: memref<16x160xf32, #tpu.memory_space<vmem>>, %arg6: memref<16x160xf32, #tpu.memory_space<vmem>>, %arg7: memref<16x160xf32, #tpu.memory_space<vmem>>) attributes {dimension_semantics = [#tpu.dimension_semantics<parallel>, #tpu.dimension_semantics<parallel>], iteration_bounds = array<i64: 2, 1>, scalar_prefetch = 1 : i64, scratch_operands = 0 : i64, tpu.core_type = #tpu.core_type<tc>, window_params = [{transform_indices = @transform_0, window_bounds = array<i64: 16, 160>}, {transform_indices = @transform_1, window_bounds = array<i64: 16, 160>}, {transform_indices = @transform_2, window_bounds = array<i64: 16, 160>}, {transform_indices = @transform_3, window_bounds = array<i64: 16, 160>}, {transform_indices = @transform_4, window_bounds = array<i64: 16, 160>}]} {
    %c0 = arith.constant 0 : index
    %c0_0 = arith.constant 0 : index
    %0 = vector.load %arg3[%c0, %c0_0] : memref<16x160xf32, #tpu.memory_space<vmem>>, vector<16x160xf32>
    %c0_1 = arith.constant 0 : index
    %1 = memref.load %arg2[%c0_1] : memref<4xf32, #tpu.memory_space<smem>>
    %2 = vector.broadcast %1 : f32 to vector<16x160xf32>
    %3 = arith.mulf %0, %2 : vector<16x160xf32>
    %c0_2 = arith.constant 0 : index
    %c0_3 = arith.constant 0 : index
    %4 = vector.load %arg4[%c0_2, %c0_3] : memref<16x160xf32, #tpu.memory_space<vmem>>, vector<16x160xf32>
    %c1 = arith.constant 1 : index
    %5 = memref.load %arg2[%c1] : memref<4xf32, #tpu.memory_space<smem>>
    %6 = vector.broadcast %5 : f32 to vector<16x160xf32>
    %7 = arith.mulf %4, %6 : vector<16x160xf32>
    %8 = arith.addf %3, %7 : vector<16x160xf32>
    %c0_4 = arith.constant 0 : index
    %c0_5 = arith.constant 0 : index
    %9 = vector.load %arg5[%c0_4, %c0_5] : memref<16x160xf32, #tpu.memory_space<vmem>>, vector<16x160xf32>
    %c2 = arith.constant 2 : index
    %10 = memref.load %arg2[%c2] : memref<4xf32, #tpu.memory_space<smem>>
    %11 = vector.broadcast %10 : f32 to vector<16x160xf32>
    %12 = arith.mulf %9, %11 : vector<16x160xf32>
    %13 = arith.addf %8, %12 : vector<16x160xf32>
    %c0_6 = arith.constant 0 : index
    %c0_7 = arith.constant 0 : index
    %14 = vector.load %arg6[%c0_6, %c0_7] : memref<16x160xf32, #tpu.memory_space<vmem>>, vector<16x160xf32>
    %c3 = arith.constant 3 : index
    %15 = memref.load %arg2[%c3] : memref<4xf32, #tpu.memory_space<smem>>
    %16 = vector.broadcast %15 : f32 to vector<16x160xf32>
    %17 = arith.mulf %14, %16 : vector<16x160xf32>
    %18 = arith.addf %13, %17 : vector<16x160xf32>
    %c0_8 = arith.constant 0 : index
    %c0_9 = arith.constant 0 : index
    %19 = vector.load %arg7[%c0_8, %c0_9] : memref<16x160xf32, #tpu.memory_space<vmem>>, vector<16x160xf32>
    tpu.vector_store %arg7[%c0_8, %c0_9], %18 {strides = array<i32>} : memref<16x160xf32, #tpu.memory_space<vmem>>, vector<16x160xf32>,
    return
  }
  func.func @transform_0(%arg0: i32, %arg1: i32, %arg2: memref<4xf32, #tpu.memory_space<smem>>) -> (i32, i32) {
    %c0_i32 = arith.constant 0 : i32
    return %arg0, %arg1 : i32, i32
  }
  func.func @transform_1(%arg0: i32, %arg1: i32, %arg2: memref<4xf32, #tpu.memory_space<smem>>) -> (i32, i32) {
    %c0_i32 = arith.constant 0 : i32
    return %arg0, %arg1 : i32, i32
  }
  func.func @transform_2(%arg0: i32, %arg1: i32, %arg2: memref<4xf32, #tpu.memory_space<smem>>) -> (i32, i32) {
    %c0_i32 = arith.constant 0 : i32
    return %arg0, %arg1 : i32, i32
  }
  func.func @transform_3(%arg0: i32, %arg1: i32, %arg2: memref<4xf32, #tpu.memory_space<smem>>) -> (i32, i32) {
    %c0_i32 = arith.constant 0 : i32
    return %arg0, %arg1 : i32, i32
  }
  func.func @transform_4(%arg0: i32, %arg1: i32, %arg2: memref<4xf32, #tpu.memory_space<smem>>) -> (i32, i32) {
    %c0_i32 = arith.constant 0 : i32
    return %arg0, %arg1 : i32, i32
  }
}

</mosaic_0001>

<bundles_post_ra>
// kernel: tpu_custom_call.1
= control target key start
LH: loop header
LB: loop body
LE: loop exit
PB: predicated region body
PF: predicated region fallthrough
CT: control target
= control target key end

     0   :  { %s1114_s21 = smov [#allocation3]   ;;  %s1529_s0 = inlined_call_operand.hbm [shape: f32[4], index: 0, kind: input, shape index: {}]   ;;  %s1530_s1 = inlined_call_operand.hbm [shape: f32[24,160], index: 1, kind: input, shape index: {}]   ;;  %s1531_s2 = inlined_call_operand.hbm [shape: f32[24,160], index: 2, kind: input, shape index: {}]   ;;  %s1532_s3 = inlined_call_operand.hbm [shape: f32[24,160], index: 3, kind: input, shape index: {}]   ;;  %s1533_s4 = inlined_call_operand.hbm [shape: f32[24,160], index: 4, kind: input, shape index: {}]   ;;  %s1534_s5 = inlined_call_operand.hbm [shape: f32[24,160], index: 5, kind: output, shape index: {}]  }
   0x1   :  { %1539 = sst [smem:[#allocation19_spill]] %s1530_s1  ;;  %s11_s20 = sshll.u32 %s1529_s0, 4  ;;  %s12_s20 = int_to_ptr.hbm [resolvable:$true] %s11_s20 }
   0x2   :  { %14 = dma.hbm_to_smem %s12_s20, 16, %s1114_s21, [#allocation2] }
   0x3   :  { %1072 = dma.done.wait [#allocation2], 16 }
   0x4   :  { %1073 = vsyncadd [#allocation2], 4294967280 }
   0x5   :  { %17 = sfence }
   0x6   :  { %18 = vsyncpa [#allocation5], 0 }
   0x7   :  { %20 = vsyncpa [#allocation5 + $0x1], 0 }
   0x8   :  { %21 = vsyncpa [#allocation8], 0 }
   0x9   :  { %23 = vsyncpa [#allocation8 + $0x1], 0 }
   0xa   :  { %24 = vsyncpa [#allocation11], 0 }
   0xb   :  { %26 = vsyncpa [#allocation11 + $0x1], 0 }
   0xc   :  { %27 = vsyncpa [#allocation6], 0 }
   0xd   :  { %29 = vsyncpa [#allocation6 + $0x1], 0  ;;  %s1163_s22 = smov 0   ;;  %s1165_s23 = smov 0  }
   0xe   :  { %s1167_s24 = smov 0   ;;  %s1169_s0 = smov 0  }
   0xf   :  { %s1171_s25 = smov 0   ;;  %s1173_s26 = smov 0  }
  0x10 LB: > { %s1194_s27 = sadd.s32 4294967295, %s1112_s26   ;;  %s698_s28 = sadd.s32 4294967294, %s1112_s26   ;;  %s1112_s26 = sphi %s1173_s26, %s35_s26   ;;  %s1108_s25 = sphi %s1171_s25, %s1559_s25   ;;  %s1104_s0 = sphi %s1169_s0, %s1558_s0   ;;  %s1100_s24 = sphi %s1167_s24, %s1557_s24   ;;  %s1096_s23 = sphi %s1165_s23, %s1556_s23   ;;  %s1092_s22 = sphi %s1163_s22, %s1555_s22  }
  0x11   : > { %s47_s29 = sadd.s32 1, %s1108_s25  ;;  %s56_s30 = sadd.s32 1, %s1100_s24 }
  0x12   : > { %p49_p0 = scmp.ge.s32.totalorder %s47_s29, 2  ;;  %p63_p1 = scmp.ne.s32.totalorder %s1100_s24, %s1096_s23 }
  0x13   : > { %p64_p2 = scmp.eq.s32.totalorder %s1112_s26, 0  ;;  %p69_p3 = scmp.ne.s32.totalorder %s1096_s23, %s1092_s22 }
  0x14   : > { %s1561_s29 = smov (%p49_p0, %s47_s29), 0  ;;  %p70_p5 = scmp.eq.s32.totalorder %s1194_s27, 0 }
  0x15   : > { %1540 = sst [smem:[#allocation18_spill]] %s1561_s29  ;;  %p1206_p4 = por %p64_p2, %p63_p1 }
  0x16   : > { %s51_s7 = ssub.s32 %s1108_s25, %s1561_s29  ;;  %p179_p6 = scmp.eq.s32.totalorder %s1194_s27, 1 }
  0x17   : > { %p54_p7 = scmp.eq.s32.totalorder %s51_s7, 0  ;;  %p1214_p8 = por %p70_p5, %p69_p3 }
  0x18   : > { %p1218_p9 = por %p179_p6, %p63_p1  ;;  %p185_p10 = scmp.eq.s32.totalorder %s698_s28, 1 }
  0x19   : > { %s1223_s10 = scalar_select %p54_p7, %s1100_s24, %s56_s30  }
  0x1a   : > { %p1225_p11 = por %p185_p10, %p69_p3  ;;  %p700_p12 = scmp.ge.s32.totalorder %s1112_s26, 2 }
  0x1c   : > { %201 = sbr.rel (%p700_p12) target bundleno = 186 (0xba), region = 16 }
  0x21   : > { %204 = sbr.rel (!%p1206_p4) target bundleno = 76 (0x4c), region = 20  ;;  %s205_s12 = sand.u32 (%p1206_p4), 1, %s1100_s24  }
  0x22   : > { %s702_s13 = sshll.u32 (%p1206_p4), %s1108_s25, 1  ;;  %s701_s14 = sshll.u32 (%p1206_p4), %s205_s12, 5 }
  0x23   : > { %s212_s15 = ssub.s32 (%p1206_p4), 3, %s702_s13  ;;  %s1239_s19 = scalar_lea.sflag (%p1206_p4), [#allocation5], %s205_s12 }
  0x24   : > { %p213_p13 = scmp.lt.s32.totalorder (%p1206_p4), %s212_s15, 2  ;;  %s209_s20 = scalar_lea.vmem (%p1206_p4), [#allocation4], %s701_s14 }
  0x26   : > { %s1563_s15 = smov (!%p213_p13, %s212_s15), 2 }
  0x27   : > { %s757_s16 = sshll.u32 %s1563_s15, 4 }
  0x28   : > { %s217_s17 = ssub.s32 32, %s757_s16 }
  0x29   : > { %s218_s18 = sshll.u32 %s217_s17, 4 }
  0x2a   : > { %219 = vsyncadd %s1239_s19, %s218_s18  ;;  %p1242_p0 = scmp.ne.s32.totalorder %s757_s16, 0  ;;  %s759_s28 = sshll.u32 %s1108_s25, 5 }
  0x2b   : > { %s1546_s1 = sld [smem:[#allocation19_spill]]  ;;  %s1250_s29 = sshll.u32 %s209_s20, 4  ;;  %s229_s29 = int_to_ptr.vmem [resolvable:$true] %s1250_s29 }
  0x2c   : > { %s1536_s14 = sshll.u32 %s1563_s15, 8 }
  0x2d   : > { %s855_s16 = sshrl.u32 %s1536_s14, 4 }
  0x31   : > { %s224_s13 = scalar_lea.hbm %s1546_s1, %s759_s28  ;;  %s864_s20 = scalar_lea.hbm %s1546_s1, 48 }
  0x32   : > { %s226_s12 = sshll.u32 %s224_s13, 4  ;;  %s1253_s12 = int_to_ptr.hbm [resolvable:$true] %s226_s12 }
  0x33   : > { %s853_s17 = sshra.s32 %s1253_s12, 4  ;;  %s854_s17 = int_to_ptr.hbm [resolvable:$true] %s853_s17 }
  0x34   : > { %s860_s18 = scalar_lea.hbm %s854_s17, %s855_s16 }
  0x35   : > { %p861_p1 = scmp.ne.s32.totalorder %s854_s17, %s860_s18  ;;  %p866_p5 = scmp.lt.s32.totalorder %s864_s20, %s860_s18 }
  0x37   : > { %p862_p2 = pnand %p861_p1, %p1242_p0 }
  0x39   : > { %p863_p3 = pneg %p862_p2 }
  0x3b   : > { %p868_p6 = pnand %p866_p5, %p863_p3 }
  0x3d   : > { %871 = shalt.err (!%p868_p6)
}
  0x3e   : > { %s872_s7 = sshra.s32 %s229_s29, 4  ;;  %s1115_s17 = smov [#allocation4]   ;;  %s873_s7 = int_to_ptr.vmem [resolvable:$true] %s872_s7 }
  0x3f   : > { %s879_s13 = scalar_lea.vmem %s873_s7, %s855_s16  ;;  %s883_s14 = scalar_lea.vmem %s1115_s17, 64 }
  0x40   : > { %p880_p7 = scmp.ne.s32.totalorder %s873_s7, %s879_s13  ;;  %p885_p1 = scmp.lt.s32.totalorder %s883_s14, %s879_s13 }
  0x42   : > { %p881_p10 = pnand %p880_p7, %p1242_p0 }
  0x44   : > { %p882_p13 = pneg %p881_p10 }
  0x46   : > { %p887_p2 = pnand %p885_p1, %p882_p13 }
  0x48   : > { %890 = shalt.err (!%p887_p2)
}
  0x49   : > { %s1116_s30 = smov 256   ;;  %s1117_s18 = smov 16  }
  0x4a   : > { %s1547_s28 = sshll.u32 %s1563_s15, 8 }
  0x4b   : > { %234 = dma.hbm_to_vmem [thread:$0]  (%p1242_p0), %s1253_s12, %s1547_s28, %s229_s29, %s1239_s19, %s1116_s30, %s1116_s30, %s1117_s18  }
  0x4c PF: > { %237 = sbr.rel (!%p1206_p4) target bundleno = 113 (0x71), region = 24  ;;  %s238_s14 = sand.u32 (%p1206_p4), 1, %s1112_s26  }
  0x4d   : > { %s240_s16 = sand.u32 (%p1206_p4), 1, %s1100_s24   ;;  %s711_s7 = sshll.u32 (%p1206_p4), %s1108_s25, 1 }
  0x4e   : > { %s710_s20 = sshll.u32 (%p1206_p4), %s240_s16, 5  ;;  %s245_s13 = ssub.s32 (%p1206_p4), 3, %s711_s7 }
  0x4f   : > { %p246_p3 = scmp.lt.s32.totalorder (%p1206_p4), %s245_s13, 2  ;;  %s1284_s29 = scalar_lea.sflag (%p1206_p4), [#allocation8], %s238_s14 }
  0x50   : > { %s242_s19 = scalar_lea.vmem (%p1206_p4), [#allocation7], %s710_s20 }
  0x51   : > { %s1565_s13 = smov (!%p246_p3, %s245_s13), 2 }
  0x52   : > { %s760_s21 = sshll.u32 %s1565_s13, 4 }
  0x53   : > { %s250_s17 = ssub.s32 32, %s760_s21 }
  0x54   : > { %s251_s15 = sshll.u32 %s250_s17, 4 }
  0x55   : > { %252 = vsyncadd %s1284_s29, %s251_s15  ;;  %p1287_p0 = scmp.ne.s32.totalorder %s760_s21, 0  ;;  %s762_s30 = sshll.u32 %s1108_s25, 5 }
  0x56   : > { %s257_s16 = scalar_lea.hbm %s1531_s2, %s762_s30  ;;  %s1295_s7 = sshll.u32 %s242_s19, 4  ;;  %s262_s7 = int_to_ptr.vmem [resolvable:$true] %s1295_s7 }
  0x57   : > { %s259_s14 = sshll.u32 %s257_s16, 4  ;;  %s1537_s20 = sshll.u32 %s1565_s13, 8  ;;  %s1298_s14 = int_to_ptr.hbm [resolvable:$true] %s259_s14 }
  0x58   : > { %s892_s17 = sshra.s32 %s1298_s14, 4  ;;  %s894_s21 = sshrl.u32 %s1537_s20, 4  ;;  %s893_s17 = int_to_ptr.hbm [resolvable:$true] %s892_s17 }
  0x59   : > { %s899_s15 = scalar_lea.hbm %s893_s17, %s894_s21  ;;  %s903_s19 = scalar_lea.hbm %s1531_s2, 48 }
  0x5a   : > { %p900_p5 = scmp.ne.s32.totalorder %s893_s17, %s899_s15  ;;  %p905_p10 = scmp.lt.s32.totalorder %s903_s19, %s899_s15 }
  0x5c   : > { %p901_p6 = pnand %p900_p5, %p1287_p0 }
  0x5e   : > { %p902_p7 = pneg %p901_p6 }
  0x60   : > { %p907_p13 = pnand %p905_p10, %p902_p7 }
  0x62   : > { %910 = shalt.err (!%p907_p13)
}
  0x63   : > { %s911_s28 = sshra.s32 %s262_s7, 4  ;;  %s1118_s17 = smov [#allocation7]   ;;  %s912_s28 = int_to_ptr.vmem [resolvable:$true] %s911_s28 }
  0x64   : > { %s918_s16 = scalar_lea.vmem %s912_s28, %s894_s21  ;;  %s922_s20 = scalar_lea.vmem %s1118_s17, 64 }
  0x65   : > { %p919_p1 = scmp.ne.s32.totalorder %s912_s28, %s918_s16  ;;  %p924_p5 = scmp.lt.s32.totalorder %s922_s20, %s918_s16 }
  0x67   : > { %p920_p2 = pnand %p919_p1, %p1287_p0 }
  0x69   : > { %p921_p3 = pneg %p920_p2 }
  0x6b   : > { %p926_p6 = pnand %p924_p5, %p921_p3 }
  0x6d   : > { %929 = shalt.err (!%p926_p6)
}
  0x6e   : > { %s1119_s18 = smov 256   ;;  %s1120_s15 = smov 16  }
  0x6f   : > { %s1549_s30 = sshll.u32 %s1565_s13, 8 }
  0x70   : > { %267 = dma.hbm_to_vmem [thread:$0]  (%p1287_p0), %s1298_s14, %s1549_s30, %s262_s7, %s1284_s29, %s1119_s18, %s1119_s18, %s1120_s15  }
  0x71 PF: > { %270 = sbr.rel (!%p1206_p4) target bundleno = 150 (0x96), region = 28  ;;  %s271_s20 = sand.u32 (%p1206_p4), 1, %s1112_s26  }
  0x72   : > { %s273_s21 = sand.u32 (%p1206_p4), 1, %s1100_s24   ;;  %s720_s28 = sshll.u32 (%p1206_p4), %s1108_s25, 1 }
  0x73   : > { %s719_s19 = sshll.u32 (%p1206_p4), %s273_s21, 5  ;;  %s278_s16 = ssub.s32 (%p1206_p4), 3, %s720_s28 }
  0x74   : > { %p279_p7 = scmp.lt.s32.totalorder (%p1206_p4), %s278_s16, 2  ;;  %s1329_s29 = scalar_lea.sflag (%p1206_p4), [#allocation8], %s271_s20 }
  0x75   : > { %s275_s7 = scalar_lea.vmem (%p1206_p4), [#allocation9], %s719_s19 }
  0x76   : > { %s1567_s16 = smov (!%p279_p7, %s278_s16), 2 }
  0x77   : > { %s763_s12 = sshll.u32 %s1567_s16, 4 }
  0x78   : > { %s283_s17 = ssub.s32 32, %s763_s12 }
  0x79   : > { %s284_s13 = sshll.u32 %s283_s17, 4 }
  0x7a   : > { %285 = vsyncadd %s1329_s29, %s284_s13  ;;  %p1332_p0 = scmp.ne.s32.totalorder %s763_s12, 0  ;;  %s765_s18 = sshll.u32 %s1108_s25, 5 }
  0x7b   : > { %s290_s21 = scalar_lea.hbm %s1532_s3, %s765_s18  ;;  %s1340_s28 = sshll.u32 %s275_s7, 4  ;;  %s295_s28 = int_to_ptr.vmem [resolvable:$true] %s1340_s28 }
  0x7c   : > { %s292_s20 = sshll.u32 %s290_s21, 4  ;;  %s1538_s19 = sshll.u32 %s1567_s16, 8  ;;  %s1343_s20 = int_to_ptr.hbm [resolvable:$true] %s292_s20 }
  0x7d   : > { %s931_s17 = sshra.s32 %s1343_s20, 4  ;;  %s933_s12 = sshrl.u32 %s1538_s19, 4  ;;  %s932_s17 = int_to_ptr.hbm [resolvable:$true] %s931_s17 }
  0x7e   : > { %s938_s13 = scalar_lea.hbm %s932_s17, %s933_s12  ;;  %s942_s7 = scalar_lea.hbm %s1532_s3, 48 }
  0x7f   : > { %p939_p10 = scmp.ne.s32.totalorder %s932_s17, %s938_s13  ;;  %p944_p2 = scmp.lt.s32.totalorder %s942_s7, %s938_s13 }
  0x81   : > { %p940_p13 = pnand %p939_p10, %p1332_p0 }
  0x83   : > { %p941_p1 = pneg %p940_p13 }
  0x85   : > { %p946_p3 = pnand %p944_p2, %p941_p1 }
  0x87   : > { %949 = shalt.err (!%p946_p3)
}
  0x88   : > { %s950_s30 = sshra.s32 %s295_s28, 4  ;;  %s1121_s17 = smov [#allocation9]   ;;  %s951_s30 = int_to_ptr.vmem [resolvable:$true] %s950_s30 }
  0x89   : > { %s957_s21 = scalar_lea.vmem %s951_s30, %s933_s12  ;;  %s961_s19 = scalar_lea.vmem %s1121_s17, 64 }
  0x8a   : > { %p958_p5 = scmp.ne.s32.totalorder %s951_s30, %s957_s21  ;;  %p963_p10 = scmp.lt.s32.totalorder %s961_s19, %s957_s21 }
  0x8c   : > { %p959_p6 = pnand %p958_p5, %p1332_p0 }
  0x8e   : > { %p960_p7 = pneg %p959_p6 }
  0x90   : > { %p965_p13 = pnand %p963_p10, %p960_p7 }
  0x92   : > { %968 = shalt.err (!%p965_p13)
}
  0x93   : > { %s1122_s15 = smov 256   ;;  %s1123_s13 = smov 16  }
  0x94   : > { %s1551_s18 = sshll.u32 %s1567_s16, 8 }
  0x95   : > { %300 = dma.hbm_to_vmem [thread:$0]  (%p1332_p0), %s1343_s20, %s1551_s18, %s295_s28, %s1329_s29, %s1122_s15, %s1122_s15, %s1123_s13  }
  0x96 PF: > { %303 = sbr.rel (!%p1206_p4) target bundleno = 186 (0xba), region = 32  ;;  %s304_s19 = sand.u32 (%p1206_p4), 1, %s1100_s24  }
  0x97   : > { %s729_s12 = sshll.u32 (%p1206_p4), %s1108_s25, 1  ;;  %s728_s7 = sshll.u32 (%p1206_p4), %s304_s19, 5 }
  0x98   : > { %s311_s30 = ssub.s32 (%p1206_p4), 3, %s729_s12  ;;  %s1373_s1 = scalar_lea.sflag (%p1206_p4), [#allocation11], %s304_s19 }
  0x99   : > { %p312_p1 = scmp.lt.s32.totalorder (%p1206_p4), %s311_s30, 2  ;;  %s308_s16 = scalar_lea.vmem (%p1206_p4), [#allocation10], %s728_s7 }
  0x9b   : > { %s1569_s30 = smov (!%p312_p1, %s311_s30), 2 }
  0x9c   : > { %s766_s21 = sshll.u32 %s1569_s30, 4 }
  0x9d   : > { %s316_s17 = ssub.s32 32, %s766_s21 }
  0x9e   : > { %s317_s14 = sshll.u32 %s316_s17, 4 }
  0x9f   : > { %318 = vsyncadd %s1373_s1, %s317_s14  ;;  %p1376_p4 = scmp.ne.s32.totalorder %s766_s21, 0  ;;  %s768_s29 = sshll.u32 %s1108_s25, 5 }
  0xa0   : > { %s323_s15 = scalar_lea.hbm %s1533_s4, %s768_s29  ;;  %s1384_s13 = sshll.u32 %s308_s16, 4  ;;  %s328_s13 = int_to_ptr.vmem [resolvable:$true] %s1384_s13 }
  0xa1   : > { %s325_s18 = sshll.u32 %s323_s15, 4  ;;  %s736_s19 = sshll.u32 %s1569_s30, 8  ;;  %s1387_s18 = int_to_ptr.hbm [resolvable:$true] %s325_s18 }
  0xa2   : > { %s970_s12 = sshra.s32 %s1387_s18, 4  ;;  %s972_s7 = sshrl.u32 %s736_s19, 4  ;;  %s971_s12 = int_to_ptr.hbm [resolvable:$true] %s970_s12 }
  0xa3   : > { %s977_s21 = scalar_lea.hbm %s971_s12, %s972_s7  ;;  %s981_s16 = scalar_lea.hbm %s1533_s4, 48 }
  0xa4   : > { %p978_p0 = scmp.ne.s32.totalorder %s971_s12, %s977_s21  ;;  %p983_p5 = scmp.lt.s32.totalorder %s981_s16, %s977_s21 }
  0xa6   : > { %p979_p2 = pnand %p978_p0, %p1376_p4 }
  0xa8   : > { %p980_p3 = pneg %p979_p2 }
  0xaa   : > { %p985_p6 = pnand %p983_p5, %p980_p3 }
  0xac   : > { %988 = shalt.err (!%p985_p6)
}
  0xad   : > { %s989_s29 = sshra.s32 %s328_s13, 4  ;;  %s1124_s20 = smov [#allocation10]   ;;  %s990_s29 = int_to_ptr.vmem [resolvable:$true] %s989_s29 }
  0xae   : > { %s996_s28 = scalar_lea.vmem %s990_s29, %s972_s7  ;;  %s1000_s15 = scalar_lea.vmem %s1124_s20, 64 }
  0xaf   : > { %p997_p7 = scmp.ne.s32.totalorder %s990_s29, %s996_s28  ;;  %p1002_p1 = scmp.lt.s32.totalorder %s1000_s15, %s996_s28 }
  0xb1   : > { %p998_p10 = pnand %p997_p7, %p1376_p4 }
  0xb3   : > { %p999_p13 = pneg %p998_p10 }
  0xb5   : > { %p1004_p0 = pnand %p1002_p1, %p999_p13 }
  0xb7   : > { %1007 = shalt.err (!%p1004_p0)
}
  0xb8   : > { %s1125_s12 = smov 256   ;;  %s1126_s21 = smov 16  }
  0xb9   : > { %333 = dma.hbm_to_vmem [thread:$0]  (%p1376_p4), %s1387_s18, %s736_s19, %s328_s13, %s1373_s1, %s1125_s12, %s1125_s12, %s1126_s21  }
  0xba PF: > { %p737_p2 = scmp.ge.s32.totalorder %s1112_s26, 1  ;;  %p335_p3 = scmp.lt.s32.totalorder %s1112_s26, 3 }
  0xbc   : > { %p336_p5 = pnand %p737_p2, %p335_p3 }
  0xbd   : > { %s1413_s7 = sand.u32 (!%p336_p5), 1, %s1096_s23  }
  0xbe   : > { %339 = sbr.rel (%p336_p5) target bundleno = 253 (0xfd), region = 36  ;;  %s1416_s17 = sshll.u32 (!%p336_p5), %s1413_s7, 5 }
  0xbf   : > { %s342_s6 = scalar_lea.sflag (!%p336_p5), [#allocation5], %s1413_s7  ;;  %s1420_s30 = scalar_lea.vmem (!%p336_p5), [#allocation4], %s1416_s17 }
  0xc3   : > { %1075 = dma.done.wait (%p1214_p8), %s342_s6, 512  }
  0xc4   : > { %1077 = vsyncadd (%p1214_p8), %s342_s6, 4294966784  ;;  %s351_s1 = sand.u32 1, %s1194_s27   ;;  %s1428_s18 = scalar_lea.vmem [#allocation7], %s1416_s17 }
  0xc5   : > { %s352_s13 = scalar_lea.sflag [#allocation8], %s351_s1 }
  0xc6   : > { %1079 = dma.done.wait (%p1214_p8), %s352_s13, 1024  }
  0xc7   : > { %1081 = vsyncadd (%p1214_p8), %s352_s13, 4294966272  ;;  %s1435_s19 = scalar_lea.vmem [#allocation9], %s1416_s17  ;;  %s372_s14 = scalar_lea.sflag [#allocation11], %s1413_s7 }
  0xc8   : > { %s1439_s16 = scalar_lea.vmem [#allocation10], %s1416_s17 }
  0xc9   : > { %1083 = dma.done.wait (%p1214_p8), %s372_s14, 512  }
  0xca   : > { %1085 = vsyncadd (%p1214_p8), %s372_s14, 4294966784  ;;  %s455_s27 = sld [smem:[#allocation3]]  ;;  %v451_v0 = vld [vmem:[%s1420_s30] sm:$0xff]  ;;  %v452_v7 = vld [vmem:[%s1420_s30 + $0x8] sm:$0xff]  ;;  %vm504_vm0 = vcmask 261120   ;;  %s415_s8 = scalar_lea.vmem [#allocation12], %s1416_s17 }
  0xcb   : > { %s743_s29 = sld [smem:[#allocation3 + $0x1]]  ;;  %v461_v2 = vld [vmem:[%s1428_s18] sm:$0xff]  ;;  %v462_v8 = vld [vmem:[%s1428_s18 + $0x8] sm:$0xff]  ;;  %v453_v15 = vld [vmem:[%s1420_s30 + $0x10] sm:$0xff]  ;;  %s509_s15 = scalar_lea.sflag [#allocation6], %s1413_s7 }
  0xcc   : > { %s744_s28 = sld [smem:[#allocation3 + $0x2]]  ;;  %v475_v3 = vld [vmem:[%s1435_s19] sm:$0xff]  ;;  %v476_v13 = vld [vmem:[%s1435_s19 + $0x8] sm:$0xff]  ;;  %v463_v20 = vld [vmem:[%s1428_s18 + $0x10] sm:$0xff]  ;;  %s747_s12 = sshll.u32 (%p1218_p9), %s1104_s0, 1 }
  0xcd   : > { %s745_s20 = sld [smem:[#allocation3 + $0x3]]  ;;  %v489_v6 = vld [vmem:[%s1439_s16] sm:$0xff]  ;;  %v490_v14 = vld [vmem:[%s1439_s16 + $0x8] sm:$0xff]  ;;  %v477_v21 = vld [vmem:[%s1435_s19 + $0x10] sm:$0xff]  ;;  %s518_s21 = ssub.s32 (%p1218_p9), 3, %s747_s12 }
  0xce   : > { %v491_v22 = vld [vmem:[%s1439_s16 + $0x10] sm:$0xff]  ;;  %v454_v27 = vld [vmem:[%s1420_s30 + $0x18] sm:$0xff]  ;;  %p519_p8 = scmp.lt.s32.totalorder (%p1218_p9), %s518_s21, 2 }
  0xcf   : > { %v464_v28 = vld [vmem:[%s1428_s18 + $0x18] sm:$0xff] }
  0xd0   : > { %v456_v1 = vstv %s455_s27  ;;  %v478_v29 = vld [vmem:[%s1435_s19 + $0x18] sm:$0xff] }
  0xd1   : > { %v457_v4 = vmul.f32 %v456_v1, %v451_v0  ;;  %v466_v5 = vstv %s743_s29  ;;  %v458_v11 = vmul.f32 %v456_v1, %v452_v7  ;;  %v459_v19 = vmul.f32 %v456_v1, %v453_v15  ;;  %v492_v33 = vld [vmem:[%s1439_s16 + $0x18] sm:$0xff] }
  0xd2   : > { %v467_v9 = vmul.f32 %v466_v5, %v461_v2  ;;  %v480_v10 = vstv %s744_s28  ;;  %v468_v12 = vmul.f32 %v466_v5, %v462_v8  ;;  %v469_v30 = vmul.f32 %v466_v5, %v463_v20 }
  0xd3   : > { %v481_v16 = vmul.f32 %v480_v10, %v475_v3  ;;  %v494_v17 = vstv %s745_s20  ;;  %v482_v18 = vmul.f32 %v480_v10, %v476_v13  ;;  %v483_v31 = vmul.f32 %v480_v10, %v477_v21 }
  0xd4   : > { %v471_v23 = vadd.f32 %v467_v9, %v457_v4  ;;  %v495_v24 = vmul.f32 %v494_v17, %v489_v6  ;;  %v472_v25 = vadd.f32 %v468_v12, %v458_v11  ;;  %v496_v26 = vmul.f32 %v494_v17, %v490_v14 }
  0xd5   : > { %v460_v32 = vmul.f32 %v456_v1, %v454_v27  ;;  %v470_v36 = vmul.f32 %v466_v5, %v464_v28  ;;  %v484_v37 = vmul.f32 %v480_v10, %v478_v29  ;;  %v473_v38 = vadd.f32 %v469_v30, %v459_v19 }
  0xd6   : > { %v485_v34 = vadd.f32 %v481_v16, %v471_v23  ;;  %v486_v35 = vadd.f32 %v482_v18, %v472_v25  ;;  %v497_v39 = vmul.f32 %v494_v17, %v491_v22  ;;  %v498_v43 = vmul.f32 %v494_v17, %v492_v33 }
  0xd7   : > { %v474_v42 = vadd.f32 %v470_v36, %v460_v32  ;;  %v487_v44 = vadd.f32 %v483_v31, %v473_v38 }
  0xd8   : > { %v499_v40 = vadd.f32 %v495_v24, %v485_v34  ;;  %v500_v41 = vadd.f32 %v496_v26, %v486_v35 }
  0xd9   : > { %v488_v45 = vadd.f32 %v484_v37, %v474_v42  ;;  %v501_v46 = vadd.f32 %v497_v39, %v487_v44  ;;  %515 = sbr.rel (!%p1218_p9) target bundleno = 253 (0xfd), region = 56 }
  0xda   : > { %503 = vst [vmem:[%s415_s8] sm:$0xff] %v499_v40 }
  0xdb   : > { %505 = vst.msk [vmem:[%s415_s8 + $0x8] sm:$0xff] %vm504_vm0, %v500_v41  ;;  %v502_v47 = vadd.f32 %v498_v43, %v488_v45 }
  0xdc   : > { %506 = vst [vmem:[%s415_s8 + $0x10] sm:$0xff] %v501_v46 }
  0xdd   : > { %507 = vst.msk [vmem:[%s415_s8 + $0x18] sm:$0xff] %vm504_vm0, %v502_v47 }
  0xde   : > { %s1571_s21 = smov (!%p519_p8, %s518_s21), 2 }
  0xdf   : > { %s769_s17 = sshll.u32 %s1571_s21, 4 }
  0xe0   : > { %s523_s6 = ssub.s32 32, %s769_s17 }
  0xe1   : > { %s524_s30 = sshll.u32 %s523_s6, 4 }
  0xe2   : > { %525 = vsyncadd %s509_s15, %s524_s30  ;;  %p1471_p4 = scmp.ne.s32.totalorder %s769_s17, 0  ;;  %s771_s9 = sshll.u32 %s1104_s0, 5 }
  0xe3   : > { %s530_s19 = scalar_lea.hbm %s1534_s5, %s771_s9  ;;  %s532_s14 = sshll.u32 %s415_s8, 4  ;;  %s1479_s14 = int_to_ptr.vmem [resolvable:$true] %s532_s14 }
  0xe4   : > { %s534_s16 = sshll.u32 %s530_s19, 4  ;;  %s754_s27 = sshll.u32 %s1571_s21, 8  ;;  %s1481_s16 = int_to_ptr.hbm [resolvable:$true] %s534_s16 }
  0xe5   : > { %s1009_s29 = sshra.s32 %s1479_s14, 4  ;;  %s1011_s28 = sshrl.u32 %s754_s27, 4  ;;  %s1010_s29 = int_to_ptr.vmem [resolvable:$true] %s1009_s29 }
  0xe6   : > { %s1016_s20 = scalar_lea.vmem %s1010_s29, %s1011_s28  ;;  %s1127_s0 = smov [#allocation12]  }
  0xe7   : > { %p1017_p9 = scmp.ne.s32.totalorder %s1010_s29, %s1016_s20  ;;  %s1020_s12 = scalar_lea.vmem %s1127_s0, 64 }
  0xe8   : > { %p1022_p10 = scmp.lt.s32.totalorder %s1020_s12, %s1016_s20 }
  0xe9   : > { %p1018_p6 = pnand %p1017_p9, %p1471_p4 }
  0xeb   : > { %p1019_p7 = pneg %p1018_p6 }
  0xed   : > { %p1024_p13 = pnand %p1022_p10, %p1019_p7 }
  0xef   : > { %1027 = shalt.err (!%p1024_p13)
}
  0xf0   : > { %s1028_s8 = sshra.s32 %s1481_s16, 4  ;;  %s1039_s9 = scalar_lea.hbm %s1534_s5, 48  ;;  %s1029_s8 = int_to_ptr.hbm [resolvable:$true] %s1028_s8 }
  0xf1   : > { %s1035_s17 = scalar_lea.hbm %s1029_s8, %s1011_s28  ;;  %p1040_p3 = scmp.lt.s32.totalorder %s1029_s8, %s1534_s5 }
  0xf2   : > { %p1036_p1 = scmp.ne.s32.totalorder %s1029_s8, %s1035_s17  ;;  %p1041_p5 = scmp.lt.s32.totalorder %s1039_s9, %s1035_s17 }
  0xf4   : > { %p1037_p0 = pnand %p1036_p1, %p1471_p4  ;;  %p1042_p8 = por %p1041_p5, %p1040_p3 }
  0xf6   : > { %p1038_p2 = pneg %p1037_p0 }
  0xf8   : > { %p1043_p9 = pnand %p1042_p8, %p1038_p2 }
  0xfa   : > { %1046 = shalt.err (!%p1043_p9)
}
  0xfb   : > { %s1128_s19 = smov 256   ;;  %s1129_s29 = smov 16  }
  0xfc   : > { %540 = dma.vmem_to_hbm [thread:$0]  (%p1471_p4), %s1479_s14, %s754_s27, %s1481_s16, %s509_s15, %s1128_s19, %s1128_s19, %s1129_s29  }
  0xfd PF: > { %s549_s28 = sand.u32 1, %s1092_s22   ;;  %p778_p6 = pnand %p700_p12, %p1225_p11 }
  0xfe   : > { %s550_s20 = scalar_lea.sflag [#allocation6], %s549_s28 }
  0xff   : > { %p779_p7 = pneg %p778_p6 }
 0x101   : > { %1087 = dma.done.wait (%p779_p7), %s550_s20, 512  }
 0x102   : > { %1089 = vsyncadd (%p779_p7), %s550_s20, 4294966784  ;;  %s35_s26 = sadd.s32 1, %s1112_s26   ;;  %s1554_s7 = sld [smem:[#allocation18_spill]] }
 0x103   : > { %p32_p10 = scmp.ge.s32.totalorder %s35_s26, 4   ;;  %s1555_s22 = smov %s1096_s23 }
 0x104   : > { %s1556_s23 = smov %s1100_s24  ;;  %s1557_s24 = smov %s1223_s10 }
 0x105   : > { %s1558_s0 = smov %s1108_s25  ;;  %34 = sbr.rel (!%p32_p10) target bundleno = 16 (0x10), region = 118 }
 0x108   : > { %s1559_s25 = smov %s1554_s7 }
 0x10a   :  { %556 = vsyncpa [#allocation5], 1 }
 0x10b   :  { %558 = vsyncpa [#allocation5 + $0x1], 1 }
 0x10c   :  { %559 = vsyncpa [#allocation8], 1 }
 0x10d   :  { %561 = vsyncpa [#allocation8 + $0x1], 1 }
 0x10e   :  { %562 = vsyncpa [#allocation11], 1 }
 0x10f   :  { %564 = vsyncpa [#allocation11 + $0x1], 1 }
 0x110   :  { %565 = vsyncpa [#allocation6], 1 }
 0x111   :  { %567 = vsyncpa [#allocation6 + $0x1], 1 }

</bundles_post_ra>
